<compile_context>
chip_gen: v5e
topology: v5e:2x2
jax: 0.10.0
libtpu: 0.0.40
codegen_flags: <defaults>
</compile_context>

<pallas_src>
import jax
import jax.numpy as jnp
from jax.experimental import pallas as pl
from jax.experimental.pallas import tpu as pltpu


def _mlp_kernel(x_ref,
                w1_ref, b1_ref,
                w2_ref, b2_ref,
                w3_ref, b3_ref,
                w4_ref, b4_ref,
                o_ref):
    # Lane-dense layout: every activation is (features, batch_tile); batch is
    # the last (lane) axis, so all vector loads/stores are unmasked.
    x = x_ref[...]                                                      # (S, TB)

    h = jnp.dot(w1_ref[...], x, preferred_element_type=jnp.float32) + b1_ref[...]
    h = jnp.maximum(h, 0.0)                                             # (16, TB)

    h = jnp.dot(w2_ref[...], h, preferred_element_type=jnp.float32) + b2_ref[...]
    h = jnp.maximum(h, 0.0)                                             # (32, TB)

    h = jnp.dot(w3_ref[...], h, preferred_element_type=jnp.float32) + b3_ref[...]
    h = jnp.maximum(h, 0.0)                                             # (16, TB)

    out = jnp.dot(w4_ref[...], h, preferred_element_type=jnp.float32) + b4_ref[...]
    o_ref[...] = out.astype(o_ref.dtype)                                # (A, TB)


def _round_up(n, m):
    return ((n + m - 1) // m) * m


def pure_linear_forward(x, params):
    """x: (B, states_dim) float32.

    params: w1..w4 in PyTorch-native (out_features, in_features) layout,
            b1..b4 as (out_features, 1).  Returns (B, actions_dim) float32.
    """
    B, S = x.shape
    A = params["w4"].shape[0]

    # Batch tile = lane tile: multiple of 128 lanes; big enough to amortize the
    # ~0.35 us per-grid-step overhead, small enough (<1 MiB double-buffered per
    # step) to stay well inside v7x's 64 MiB VMEM.
    TB = min(8192, _round_up(B, 128))
    B_pad = _round_up(B, TB)
    n_tiles = B_pad // TB

    # (B, S) -> (S, B_pad): batch on the lane axis; zero-pad trailing columns.
    x_t = x.T
    if B_pad != B:
        x_t = jnp.pad(x_t, ((0, 0), (0, B_pad - B)))

    def resident_spec(shape):
        # Full-array block, same block index every grid step -> stays in VMEM.
        return pl.BlockSpec(shape, lambda i: (0, 0))

    in_specs = [
        pl.BlockSpec((S, TB), lambda i: (0, i)),                 # x (tiled batch)
        resident_spec(params["w1"].shape), resident_spec(params["b1"].shape),
        resident_spec(params["w2"].shape), resident_spec(params["b2"].shape),
        resident_spec(params["w3"].shape), resident_spec(params["b3"].shape),
        resident_spec(params["w4"].shape), resident_spec(params["b4"].shape),
    ]

    out_t = pl.pallas_call(
        _mlp_kernel,
        out_shape=jax.ShapeDtypeStruct((A, B_pad), jnp.float32),
        grid=(n_tiles,),
        in_specs=in_specs,
        out_specs=pl.BlockSpec((A, TB), lambda i: (0, i)),
        compiler_params=pltpu.CompilerParams(
            dimension_semantics=("parallel",)),
    )(x_t,
      params["w1"], params["b1"],
      params["w2"], params["b2"],
      params["w3"], params["b3"],
      params["w4"], params["b4"])

    # (A, B_pad) -> (B, A)
    return out_t[:, :B].T


def init_pure_linear_params(key, states_dim, actions_dim):
    """Mirror PureLinear.__layer_init: orthogonal weights (w_scale=1.0), zero bias.

    Weights kept in PyTorch-native (out_features, in_features) layout; biases
    stored as (out_features, 1) for lane-broadcast inside the kernel.
    """
    ortho = jax.nn.initializers.orthogonal(scale=1.0)
    k1, k2, k3, k4 = jax.random.split(key, 4)
    w1 = ortho(k1, (16, states_dim), jnp.float32)
    w2 = ortho(k2, (32, 16), jnp.float32)
    w3 = ortho(k3, (16, 32), jnp.float32)
    w4 = ortho(k4, (actions_dim, 16), jnp.float32)
    return {
        "w1": w1, "b1": jnp.zeros((16, 1), jnp.float32),
        "w2": w2, "b2": jnp.zeros((32, 1), jnp.float32),
        "w3": w3, "b3": jnp.zeros((16, 1), jnp.float32),
        "w4": w4, "b4": jnp.zeros((actions_dim, 1), jnp.float32),
    }


def _reference_forward(x, p):
    h = jnp.maximum(x @ p["w1"].T + p["b1"][:, 0], 0.0)
    h = jnp.maximum(h @ p["w2"].T + p["b2"][:, 0], 0.0)
    h = jnp.maximum(h @ p["w3"].T + p["b3"][:, 0], 0.0)
    return h @ p["w4"].T + p["b4"][:, 0]


if __name__ == "__main__":
    states_dim = 8     # config.states_dim
    actions_dim = 4    # config.actions_dim
    batch = 2

    key = jax.random.PRNGKey(0)
    kx, kp = jax.random.split(key)

    x = jax.random.normal(kx, (batch, states_dim), jnp.float32)
    params = init_pure_linear_params(kp, states_dim, actions_dim)

    out = pure_linear_forward(x, params)
    out = jax.block_until_ready(out)

    ref = _reference_forward(x, params)
    assert out.shape == (batch, actions_dim)
    assert jnp.allclose(out, ref, atol=1e-5, rtol=1e-5)

    print("KERNEL_OK")
</pallas_src>

<mosaic_0001>
module attributes {stable_mosaic.version = 11 : i64} {
  func.func @_mlp_kernel(%arg0: i32, %arg1: memref<8x128xf32, #tpu.memory_space<vmem>>, %arg2: memref<16x8xf32, #tpu.memory_space<vmem>>, %arg3: memref<16x1xf32, #tpu.memory_space<vmem>>, %arg4: memref<32x16xf32, #tpu.memory_space<vmem>>, %arg5: memref<32x1xf32, #tpu.memory_space<vmem>>, %arg6: memref<16x32xf32, #tpu.memory_space<vmem>>, %arg7: memref<16x1xf32, #tpu.memory_space<vmem>>, %arg8: memref<4x16xf32, #tpu.memory_space<vmem>>, %arg9: memref<4x1xf32, #tpu.memory_space<vmem>>, %arg10: memref<4x128xf32, #tpu.memory_space<vmem>>) attributes {dimension_semantics = [#tpu.dimension_semantics<parallel>], iteration_bounds = array<i64: 1>, scalar_prefetch = 0 : i64, scratch_operands = 0 : i64, tpu.core_type = #tpu.core_type<tc>, window_params = [{transform_indices = @transform_0, window_bounds = array<i64: 8, 128>}, {pipeline_mode = #tpu.pipeline_mode<synchronous>, transform_indices = @transform_1, window_bounds = array<i64: 16, 8>}, {pipeline_mode = #tpu.pipeline_mode<synchronous>, transform_indices = @transform_2, window_bounds = array<i64: 16, 1>}, {pipeline_mode = #tpu.pipeline_mode<synchronous>, transform_indices = @transform_3, window_bounds = array<i64: 32, 16>}, {pipeline_mode = #tpu.pipeline_mode<synchronous>, transform_indices = @transform_4, window_bounds = array<i64: 32, 1>}, {pipeline_mode = #tpu.pipeline_mode<synchronous>, transform_indices = @transform_5, window_bounds = array<i64: 16, 32>}, {pipeline_mode = #tpu.pipeline_mode<synchronous>, transform_indices = @transform_6, window_bounds = array<i64: 16, 1>}, {pipeline_mode = #tpu.pipeline_mode<synchronous>, transform_indices = @transform_7, window_bounds = array<i64: 4, 16>}, {pipeline_mode = #tpu.pipeline_mode<synchronous>, transform_indices = @transform_8, window_bounds = array<i64: 4, 1>}, {transform_indices = @transform_9, window_bounds = array<i64: 4, 128>}]} {
    %c0 = arith.constant 0 : index
    %c0_0 = arith.constant 0 : index
    %0 = vector.load %arg1[%c0, %c0_0] : memref<8x128xf32, #tpu.memory_space<vmem>>, vector<8x128xf32>
    %c0_1 = arith.constant 0 : index
    %c0_2 = arith.constant 0 : index
    %1 = vector.load %arg2[%c0_1, %c0_2] : memref<16x8xf32, #tpu.memory_space<vmem>>, vector<16x8xf32>
    %cst = arith.constant dense<0.000000e+00> : vector<16x128xf32>
    %2 = tpu.matmul %1, %0, %cst {dimension_numbers = #tpu.dot_dimension_numbers<[1], [0], [0], [1], [0, 0, 1, 1], [], []>} : vector<16x8xf32>, vector<8x128xf32>, vector<16x128xf32> -> vector<16x128xf32>
    %c0_3 = arith.constant 0 : index
    %c0_4 = arith.constant 0 : index
    %3 = vector.load %arg3[%c0_3, %c0_4] : memref<16x1xf32, #tpu.memory_space<vmem>>, vector<16x1xf32>
    %4 = vector.broadcast %3 : vector<16x1xf32> to vector<16x128xf32>
    %5 = arith.addf %2, %4 : vector<16x128xf32>
    %cst_5 = arith.constant 0.000000e+00 : f32
    %6 = vector.broadcast %cst_5 : f32 to vector<16x128xf32>
    %7 = arith.maximumf %5, %6 : vector<16x128xf32>
    %c0_6 = arith.constant 0 : index
    %c0_7 = arith.constant 0 : index
    %8 = vector.load %arg4[%c0_6, %c0_7] : memref<32x16xf32, #tpu.memory_space<vmem>>, vector<32x16xf32>
    %cst_8 = arith.constant dense<0.000000e+00> : vector<32x128xf32>
    %9 = tpu.matmul %8, %7, %cst_8 {dimension_numbers = #tpu.dot_dimension_numbers<[1], [0], [0], [1], [0, 0, 1, 1], [], []>} : vector<32x16xf32>, vector<16x128xf32>, vector<32x128xf32> -> vector<32x128xf32>
    %c0_9 = arith.constant 0 : index
    %c0_10 = arith.constant 0 : index
    %10 = vector.load %arg5[%c0_9, %c0_10] : memref<32x1xf32, #tpu.memory_space<vmem>>, vector<32x1xf32>
    %11 = vector.broadcast %10 : vector<32x1xf32> to vector<32x128xf32>
    %12 = arith.addf %9, %11 : vector<32x128xf32>
    %cst_11 = arith.constant 0.000000e+00 : f32
    %13 = vector.broadcast %cst_11 : f32 to vector<32x128xf32>
    %14 = arith.maximumf %12, %13 : vector<32x128xf32>
    %c0_12 = arith.constant 0 : index
    %c0_13 = arith.constant 0 : index
    %15 = vector.load %arg6[%c0_12, %c0_13] : memref<16x32xf32, #tpu.memory_space<vmem>>, vector<16x32xf32>
    %cst_14 = arith.constant dense<0.000000e+00> : vector<16x128xf32>
    %16 = tpu.matmul %15, %14, %cst_14 {dimension_numbers = #tpu.dot_dimension_numbers<[1], [0], [0], [1], [0, 0, 1, 1], [], []>} : vector<16x32xf32>, vector<32x128xf32>, vector<16x128xf32> -> vector<16x128xf32>
    %c0_15 = arith.constant 0 : index
    %c0_16 = arith.constant 0 : index
    %17 = vector.load %arg7[%c0_15, %c0_16] : memref<16x1xf32, #tpu.memory_space<vmem>>, vector<16x1xf32>
    %18 = vector.broadcast %17 : vector<16x1xf32> to vector<16x128xf32>
    %19 = arith.addf %16, %18 : vector<16x128xf32>
    %cst_17 = arith.constant 0.000000e+00 : f32
    %20 = vector.broadcast %cst_17 : f32 to vector<16x128xf32>
    %21 = arith.maximumf %19, %20 : vector<16x128xf32>
    %c0_18 = arith.constant 0 : index
    %c0_19 = arith.constant 0 : index
    %22 = vector.load %arg8[%c0_18, %c0_19] : memref<4x16xf32, #tpu.memory_space<vmem>>, vector<4x16xf32>
    %cst_20 = arith.constant dense<0.000000e+00> : vector<4x128xf32>
    %23 = tpu.matmul %22, %21, %cst_20 {dimension_numbers = #tpu.dot_dimension_numbers<[1], [0], [0], [1], [0, 0, 1, 1], [], []>} : vector<4x16xf32>, vector<16x128xf32>, vector<4x128xf32> -> vector<4x128xf32>
    %c0_21 = arith.constant 0 : index
    %c0_22 = arith.constant 0 : index
    %24 = vector.load %arg9[%c0_21, %c0_22] : memref<4x1xf32, #tpu.memory_space<vmem>>, vector<4x1xf32>
    %25 = vector.broadcast %24 : vector<4x1xf32> to vector<4x128xf32>
    %26 = arith.addf %23, %25 : vector<4x128xf32>
    %c0_23 = arith.constant 0 : index
    %c0_24 = arith.constant 0 : index
    %27 = vector.load %arg10[%c0_23, %c0_24] : memref<4x128xf32, #tpu.memory_space<vmem>>, vector<4x128xf32>
    tpu.vector_store %arg10[%c0_23, %c0_24], %26 {strides = array<i32>} : memref<4x128xf32, #tpu.memory_space<vmem>>, vector<4x128xf32>,
    return
  }
  func.func @transform_0(%arg0: i32) -> (i32, i32) {
    %c0_i32 = arith.constant 0 : i32
    %c0_i32_0 = arith.constant 0 : i32
    return %c0_i32, %arg0 : i32, i32
  }
  func.func @transform_1(%arg0: i32) -> (i32, i32) {
    %c0_i32 = arith.constant 0 : i32
    %c0_i32_0 = arith.constant 0 : i32
    %c0_i32_1 = arith.constant 0 : i32
    return %c0_i32, %c0_i32_0 : i32, i32
  }
  func.func @transform_2(%arg0: i32) -> (i32, i32) {
    %c0_i32 = arith.constant 0 : i32
    %c0_i32_0 = arith.constant 0 : i32
    %c0_i32_1 = arith.constant 0 : i32
    return %c0_i32, %c0_i32_0 : i32, i32
  }
  func.func @transform_3(%arg0: i32) -> (i32, i32) {
    %c0_i32 = arith.constant 0 : i32
    %c0_i32_0 = arith.constant 0 : i32
    %c0_i32_1 = arith.constant 0 : i32
    return %c0_i32, %c0_i32_0 : i32, i32
  }
  func.func @transform_4(%arg0: i32) -> (i32, i32) {
    %c0_i32 = arith.constant 0 : i32
    %c0_i32_0 = arith.constant 0 : i32
    %c0_i32_1 = arith.constant 0 : i32
    return %c0_i32, %c0_i32_0 : i32, i32
  }
  func.func @transform_5(%arg0: i32) -> (i32, i32) {
    %c0_i32 = arith.constant 0 : i32
    %c0_i32_0 = arith.constant 0 : i32
    %c0_i32_1 = arith.constant 0 : i32
    return %c0_i32, %c0_i32_0 : i32, i32
  }
  func.func @transform_6(%arg0: i32) -> (i32, i32) {
    %c0_i32 = arith.constant 0 : i32
    %c0_i32_0 = arith.constant 0 : i32
    %c0_i32_1 = arith.constant 0 : i32
    return %c0_i32, %c0_i32_0 : i32, i32
  }
  func.func @transform_7(%arg0: i32) -> (i32, i32) {
    %c0_i32 = arith.constant 0 : i32
    %c0_i32_0 = arith.constant 0 : i32
    %c0_i32_1 = arith.constant 0 : i32
    return %c0_i32, %c0_i32_0 : i32, i32
  }
  func.func @transform_8(%arg0: i32) -> (i32, i32) {
    %c0_i32 = arith.constant 0 : i32
    %c0_i32_0 = arith.constant 0 : i32
    %c0_i32_1 = arith.constant 0 : i32
    return %c0_i32, %c0_i32_0 : i32, i32
  }
  func.func @transform_9(%arg0: i32) -> (i32, i32) {
    %c0_i32 = arith.constant 0 : i32
    %c0_i32_0 = arith.constant 0 : i32
    return %c0_i32, %arg0 : i32, i32
  }
}

</mosaic_0001>

<bundles_post_ra>
// kernel: tpu_custom_call.1
= control target key start
LH: loop header
LB: loop body
LE: loop exit
PB: predicated region body
PF: predicated region fallthrough
CT: control target
= control target key end

     0   :  { %vm48_vm0 = vcmask 64512   ;;  %v289_v3 = vmov 0   ;;  %s406_s0 = inlined_call_operand.vmem [shape: f32[8,128], index: 0, kind: input, shape index: {}]   ;;  %s407_s1 = inlined_call_operand.vmem [shape: f32[16,8], index: 1, kind: input, shape index: {}]   ;;  %s408_s2 = inlined_call_operand.vmem [shape: f32[16,1], index: 2, kind: input, shape index: {}]   ;;  %s409_s3 = inlined_call_operand.vmem [shape: f32[32,16], index: 3, kind: input, shape index: {}]   ;;  %s410_s4 = inlined_call_operand.vmem [shape: f32[32,1], index: 4, kind: input, shape index: {}]   ;;  %s411_s5 = inlined_call_operand.vmem [shape: f32[16,32], index: 5, kind: input, shape index: {}]   ;;  %s412_s6 = inlined_call_operand.vmem [shape: f32[16,1], index: 6, kind: input, shape index: {}]   ;;  %s413_s7 = inlined_call_operand.vmem [shape: f32[4,16], index: 7, kind: input, shape index: {}]   ;;  %s414_s8 = inlined_call_operand.vmem [shape: f32[4,1], index: 8, kind: input, shape index: {}]   ;;  %s415_s9 = inlined_call_operand.hbm [shape: f32[4,128], index: 9, kind: output, shape index: {}]  }
   0x1   :  { %v33_v0 = vld [vmem:[%s406_s0] sm:$0xff]  ;;  %v37_v1 = vld [vmem:[%s408_s2 + $0x8] sm:$0xff]  ;;  %260 = vset.pattern.permute.xlu0 %v289_v3 }
   0x2   :  { %v34_v2 = vld [vmem:[%s407_s1] sm:$0xff]  ;;  %70 = vmatpush.msra.mxu0 %v33_v0  ;;  %45 = vperm.xlu0 %260, %v37_v1  }
   0x3   :  { %247 = vmatmul.msk.f32.vlgmr.msra.gmra.mxu0 %vm48_vm0, %v34_v2 }
   0x4   :  { %14 = vsyncpa [#allocation3], 0  ;;  %261 = vset.pattern.permute.xlu1 %v289_v3  ;;  %262 = vset.pattern.permute.xlu2 %v289_v3  ;;  %v36_v4 = vld [vmem:[%s408_s2] sm:$0xff]  ;;  %v35_v5 = vld [vmem:[%s407_s1 + $0x8] sm:$0xff]  ;;  %vm108_vm1 = vcmask 130048   ;;  %vm168_vm2 = vcmask 261120  }
   0x5   :  { %v157_v6 = vld [vmem:[%s412_s6 + $0x8] sm:$0xff]  ;;  %v87_v7 = vld [vmem:[%s410_s4 + $0x18] sm:$0xff]  ;;  %v86_v8 = vld [vmem:[%s410_s4 + $0x10] sm:$0xff]  ;;  %s290_s18 = smov [#allocation2]   ;;  %s238_s21 = sshll.u32 %s415_s9, 4  ;;  %s239_s21 = int_to_ptr.hbm [resolvable:$true] %s238_s21 }
   0x6   :  { %105 = vperm.xlu1 %261, %v87_v7   ;;  %v156_v11 = vld [vmem:[%s412_s6] sm:$0xff]  ;;  %v85_v12 = vld [vmem:[%s410_s4 + $0x8] sm:$0xff]  ;;  %v83_v21 = vld [vmem:[%s409_s3 + $0x18] sm:$0xff]  ;;  %s236_s19 = sshll.u32 %s290_s18, 4  ;;  %s237_s19 = int_to_ptr.vmem [resolvable:$true] %s236_s19 }
   0x7   :  { %95 = vperm.xlu2 %262, %v85_v12   ;;  %v84_v13 = vld [vmem:[%s410_s4] sm:$0xff]  ;;  %v81_v23 = vld [vmem:[%s409_s3 + $0x8] sm:$0xff]  ;;  %v82_v24 = vld [vmem:[%s409_s3 + $0x10] sm:$0xff] }
   0x8   :  { %v80_v20 = vld [vmem:[%s409_s3] sm:$0xff]  ;;  %v155_v42 = vld [vmem:[%s411_s5 + $0x8] sm:$0xff] }
   0x9   :  { %v201_v22 = vld [vmem:[%s414_s8] sm:$0xf] }
   0xa   :  { %40 = vperm.xlu0 %260, %v36_v4   ;;  %v154_v41 = vld [vmem:[%s411_s5] sm:$0xff] }
   0xb   :  { %248 = vmatmul.msk.f32.gmra.mxu0 %vm48_vm0, %v35_v5  ;;  %v200_v51 = vld [vmem:[%s413_s7] sm:$0xf] }
   0xe   :  { %100 = vperm.xlu1 %261, %v86_v8  }
   0xf   :  { %90 = vperm.xlu2 %262, %v84_v13  }
  0x12   :  { %165 = vperm.xlu0 %260, %v157_v6  }
  0x16   :  { %160 = vperm.xlu1 %261, %v156_v11  }
  0x17   :  { %204 = vperm.xlu2 %262, %v201_v22  }
  0x61   :  { %v96_v26 = vpop.permute.xlu2 %95 }
  0x69   :  { %v91_v32 = vpop.permute.xlu2 %90 }
  0x71   :  { %v205_v52 = vpop.permute.xlu2 %204 }
  0x74   :  { %v46_v9 = vpop.permute.xlu0 %45 }
  0x78   :  { %v106_v27 = vpop.permute.xlu1 %105 }
  0x7c   :  { %v41_v14 = vpop.permute.xlu0 %40 }
  0x80   :  { %v72_v10 = vpop.f32.mrf.mxu0  ;;  %v101_v33 = vpop.permute.xlu1 %100 }
  0x81   :  { %v73_v16 = vadd.f32 %v72_v10, %v41_v14 }
  0x83   :  { %v78_v19 = vmax.f32 %v73_v16, 0.0 }
  0x84   :  { %v166_v44 = vpop.permute.xlu0 %165 }
  0x88   :  { %v75_v15 = vpop.f32.mrf.mxu0  ;;  %v161_v45 = vpop.permute.xlu1 %160 }
  0x89   :  { %v76_v17 = vadd.f32 %v75_v15, %v46_v9 }
  0x8b   :  { %v79_v18 = vmax.f32 %v76_v17, 0.0 }
  0x8d   :  { %135 = vmatpush.msra.mxu1 %v79_v18  ;;  %256 = vmatpush.msra.mxu3 %v79_v18 }
  0x8f   :  { %136 = vmatpush.msra.mxu1 %v78_v19  ;;  %257 = vmatpush.msra.mxu3 %v78_v19 }
  0x90   :  { %249 = vmatmul.msk.f32.vlgmr.msra.gmra.mxu1 %vm108_vm1, %v80_v20  ;;  %252 = vmatmul.msk.f32.vlgmr.msra.gmra.mxu3 %vm108_vm1, %v83_v21 }
  0x98   :  { %250 = vmatmul.msk.f32.gmra.mxu1 %vm108_vm1, %v81_v23 }
  0xa0   :  { %251 = vmatmul.msk.f32.gmra.mxu1 %vm108_vm1, %v82_v24 }
 0x10d   :  { %v138_v25 = vpop.f32.mrf.mxu1 }
 0x10e   :  { %v139_v37 = vadd.f32 %v138_v25, %v91_v32 }
 0x110   :  { %v150_v40 = vmax.f32 %v139_v37, 0.0 }
 0x113   :  { %v147_v28 = vpop.f32.mrf.mxu3 }
 0x114   :  { %v148_v29 = vadd.f32 %v147_v28, %v106_v27 }
 0x115   :  { %v141_v30 = vpop.f32.mrf.mxu1 }
 0x116   :  { %v153_v31 = vmax.f32 %v148_v29, 0.0  ;;  %v142_v35 = vadd.f32 %v141_v30, %v96_v26 }
 0x118   :  { %187 = vmatpush.msra.mxu2 %v153_v31  ;;  %v151_v39 = vmax.f32 %v142_v35, 0.0 }
 0x11d   :  { %v144_v34 = vpop.f32.mrf.mxu1 }
 0x11e   :  { %v145_v36 = vadd.f32 %v144_v34, %v101_v33 }
 0x120   :  { %v152_v38 = vmax.f32 %v145_v36, 0.0 }
 0x122   :  { %188 = vmatpush.msra.mxu2 %v152_v38 }
 0x124   :  { %189 = vmatpush.msra.mxu2 %v151_v39 }
 0x126   :  { %190 = vmatpush.msra.mxu2 %v150_v40 }
 0x127   :  { %253 = vmatmul.msk.f32.vlgmr.msra.gmra.mxu2 %vm168_vm2, %v154_v41 }
 0x12f   :  { %254 = vmatmul.msk.f32.gmra.mxu2 %vm168_vm2, %v155_v42 }
 0x1aa   :  { %v192_v43 = vpop.f32.mrf.mxu2 }
 0x1ab   :  { %v193_v47 = vadd.f32 %v192_v43, %v161_v45 }
 0x1ad   :  { %v198_v50 = vmax.f32 %v193_v47, 0.0 }
 0x1b2   :  { %v195_v46 = vpop.f32.mrf.mxu2 }
 0x1b3   :  { %v196_v48 = vadd.f32 %v195_v46, %v166_v44 }
 0x1b5   :  { %v199_v49 = vmax.f32 %v196_v48, 0.0 }
 0x1b7   :  { %224 = vmatpush.msrb.mxu3 %v199_v49 }
 0x1b9   :  { %225 = vmatpush.msrb.mxu3 %v198_v50 }
 0x1ba   :  { %255 = vmatmul.msk.f32.vlgmr.msrb.gmra.mxu3 %vm108_vm1, %v200_v51 }
 0x23d   :  { %v227_v53 = vpop.f32.mrf.mxu3 }
 0x23e   :  { %v228_v54 = vadd.f32 %v227_v53, %v205_v52 }
 0x240   :  { %230 = vst [vmem:[#allocation2] sm:$0xf] %v228_v54 }
 0x241   :  { %241 = dma.vmem_to_hbm [thread:$0]  %s237_s19, 64, %s239_s21, [#allocation3]  }
 0x242   :  { %287 = dma.done.wait [#allocation3], 64  }
 0x243   :  { %288 = vsyncadd [#allocation3], 4294967232 }
 0x244   :  { %246 = vsyncpa [#allocation3], 1 }

</bundles_post_ra>
